<compile_context>
chip_gen: v5e
topology: v5e:2x2
jax: 0.10.0
libtpu: 0.0.40
codegen_flags: <defaults>
</compile_context>

<pallas_src>
import functools

import jax
import jax.numpy as jnp
from jax.experimental import pallas as pl
from jax.experimental.pallas import tpu as pltpu

N_MOL = 2
N_ATOMS_PER_MOL = 8
N_ATOMS = N_MOL * N_ATOMS_PER_MOL
FEAT = 128
LANE = 128            # lane-dense output width (multiple of 128)

_E_COL = 0            # slab column holding the energy head
_G_LO, _G_HI = 1, 4   # slab columns holding the 3 gradient-head outputs


# ---------------------------------------------------------------------------
# Pallas kernel: one fused linear readout (energy + grad heads in one matmul)
# ---------------------------------------------------------------------------
def _fused_readout_kernel(x_ref, w_ref, b_ref, y_ref, e_ref):
    """y = x @ W_slab + b_slab  (single MXU push, lane-dense [N, 128] store);
    e = per-molecule sum of y over contiguous atom blocks (sublane reduction)."""
    y = jnp.dot(x_ref[...], w_ref[...],
                preferred_element_type=jnp.float32) + b_ref[...]       # [N, 128]
    y_ref[...] = y
    n_mol, lanes = e_ref.shape
    apm = y.shape[0] // n_mol                 # atoms per molecule (contiguous)
    # segment sum -> XLU sublane reduce; reshape is tile-aligned (apm == 8)
    e_ref[...] = jnp.sum(y.reshape(n_mol, apm, lanes), axis=1)         # [n_mol, 128]


def fused_readout(x, w_slab, b_slab, n_mol):
    """Single pallas_call; whole problem fits one VMEM block at this toy size.
    # TODO(synk): for large N_ATOMS add a 1-D grid over atom tiles with a
    # resident (n_mol, LANE) scratch accumulator (pl.when init/finalize)."""
    n_atoms = x.shape[0]
    vmem = pl.BlockSpec(memory_space=pltpu.MemorySpace.VMEM)
    y, e = pl.pallas_call(
        _fused_readout_kernel,
        out_shape=(jax.ShapeDtypeStruct((n_atoms, LANE), jnp.float32),
                   jax.ShapeDtypeStruct((n_mol, LANE), jnp.float32)),
        in_specs=[vmem, vmem, vmem],
        out_specs=(vmem, vmem),
    )(x, w_slab, b_slab)
    return y, e


def _pack_slabs(w_energy, b_energy, w_grad):
    """Pack the (possibly folded) linear heads into lane-dense slabs."""
    feat = w_energy.shape[0]
    w_slab = jnp.zeros((feat, LANE), jnp.float32)
    w_slab = w_slab.at[:, _E_COL:_E_COL + 1].set(w_energy)
    w_slab = w_slab.at[:, _G_LO:_G_HI].set(w_grad)
    b_slab = jnp.zeros((1, LANE), jnp.float32)
    b_slab = b_slab.at[:, _E_COL:_E_COL + 1].set(b_energy)
    return w_slab, b_slab


@functools.partial(jax.jit, static_argnames=("n_mol",))
def _gap_to_abs_fused(x, gw_e, gb_e, gw_g, pw_e, pb_e, pw_g, factor, n_mol):
    """ground(x) + factor * gap(x) for two LINEAR readouts == one readout with
    folded parameters -> fold on-device, then one fused Pallas kernel."""
    w_e = gw_e + factor * pw_e
    b_e = gb_e + factor * pb_e
    w_g = gw_g + factor * pw_g
    w_slab, b_slab = _pack_slabs(w_e, b_e, w_g)
    y, e = fused_readout(x, w_slab, b_slab, n_mol)
    return e[:, _E_COL:_E_COL + 1], y[:, _G_LO:_G_HI]


@functools.partial(jax.jit, static_argnames=("n_mol",))
def _single_readout(x, w_e, b_e, w_g, n_mol):
    w_slab, b_slab = _pack_slabs(w_e, b_e, w_g)
    y, e = fused_readout(x, w_slab, b_slab, n_mol)
    return e[:, _E_COL:_E_COL + 1], y[:, _G_LO:_G_HI]


# ---------------------------------------------------------------------------
# Synthetic sub-models + the PainnGapToAbs wrapper (glue, mirrors PyTorch code)
# ---------------------------------------------------------------------------
class SyntheticPainnModel:
    """Minimal stand-in for a PaiNN model with pool_dic / grad_keys attributes."""

    def __init__(self, w_energy, b_energy, w_grad):
        self.w_energy = w_energy
        self.b_energy = b_energy
        self.w_grad = w_grad
        self.pool_dic = {"energy": "sum"}
        self.grad_keys = ["energy_grad"]
        self.output_keys = ["energy", "energy_grad"]

    def __call__(self, x, n_mol):
        energy, energy_grad = _single_readout(
            x, self.w_energy, self.b_energy, self.w_grad, n_mol=n_mol)
        return {"energy": energy, "energy_grad": energy_grad}


class PainnGapToAbsPallas:
    """Pallas port of PainnGapToAbs.forward semantics (ground + factor * gap)."""

    def __init__(self, ground_model, gap_model, subtract_gap):
        self.ground_model = ground_model
        self.gap_model = gap_model
        self.subtract_gap = subtract_gap
        self.models = [self.ground_model, self.gap_model]

    def get_model_attr(self, model, key):
        sub = getattr(model, "painn_model", model)
        return getattr(sub, key)

    @property
    def grad_keys(self):
        ground_grads = set(self.get_model_attr(self.ground_model, "grad_keys"))
        gap_grads = set(self.get_model_attr(self.gap_model, "grad_keys"))
        return [i for i in ground_grads if i in gap_grads]

    def forward(self, x, n_mol):
        factor = -1.0 if self.subtract_gap else 1.0
        gm = getattr(self.ground_model, "painn_model", self.ground_model)
        pm = getattr(self.gap_model, "painn_model", self.gap_model)

        # Both sub-models are linear readouts, so "run ground, run gap, add"
        # is computed exactly (up to fp summation order) by ONE fused kernel
        # with folded parameters -> 1 pallas_call instead of 4.
        energy, energy_grad = _gap_to_abs_fused(
            x, gm.w_energy, gm.b_energy, gm.w_grad,
            pm.w_energy, pm.b_energy, pm.w_grad,
            factor, n_mol=n_mol)
        candidates = {"energy": energy, "energy_grad": energy_grad}

        # Same key-filtering logic as the original PyTorch forward.
        combined_results = {}
        for key, val in candidates.items():
            pool_dics = [self.get_model_attr(m, "pool_dic") for m in self.models]
            in_pool = all(key in dic for dic in pool_dics)
            in_grad = all(key in self.get_model_attr(m, "grad_keys")
                          for m in self.models)
            if not (in_pool or in_grad):
                continue
            combined_results[key] = val
        return combined_results


# ---------------------------------------------------------------------------
# Reference (plain JAX) for a correctness check
# ---------------------------------------------------------------------------
def reference_forward(x, pool_mat, ground_params, gap_params, subtract_gap):
    def readout(p):
        we, be, wg = p
        e_atom = x @ we + be
        return pool_mat @ e_atom, x @ wg

    e_g, g_g = readout(ground_params)
    e_p, g_p = readout(gap_params)
    f = -1.0 if subtract_gap else 1.0
    return {"energy": e_g + f * e_p, "energy_grad": g_g + f * g_p}


if __name__ == "__main__":
    key = jax.random.PRNGKey(0)
    k_x, k_we1, k_wg1, k_we2, k_wg2 = jax.random.split(key, 5)

    # deterministic inputs / parameters
    x = jax.random.normal(k_x, (N_ATOMS, FEAT), dtype=jnp.float32)

    # molecule i owns the contiguous atom block [i*8, (i+1)*8); the reference
    # uses an explicit one-hot pooling matrix built from that assignment.
    mol_ids = jnp.repeat(jnp.arange(N_MOL), N_ATOMS_PER_MOL)
    pool_mat = (mol_ids[:, None] == jnp.arange(N_MOL)[None, :]
                ).astype(jnp.float32).T                        # [n_mol, N_atoms]

    ground_params = (
        jax.random.normal(k_we1, (FEAT, 1), dtype=jnp.float32) * 0.05,
        jnp.full((1, 1), 0.1, dtype=jnp.float32),
        jax.random.normal(k_wg1, (FEAT, 3), dtype=jnp.float32) * 0.05,
    )
    gap_params = (
        jax.random.normal(k_we2, (FEAT, 1), dtype=jnp.float32) * 0.05,
        jnp.full((1, 1), -0.2, dtype=jnp.float32),
        jax.random.normal(k_wg2, (FEAT, 3), dtype=jnp.float32) * 0.05,
    )

    ground_model = SyntheticPainnModel(*ground_params)
    gap_model = SyntheticPainnModel(*gap_params)

    subtract_gap = True
    model = PainnGapToAbsPallas(ground_model, gap_model, subtract_gap)

    out = model.forward(x, N_MOL)
    out = jax.block_until_ready(out)

    ref = reference_forward(x, pool_mat, ground_params, gap_params, subtract_gap)
    assert set(out.keys()) == {"energy", "energy_grad"}
    assert model.grad_keys == ["energy_grad"]
    for k in out:
        assert out[k].shape == ref[k].shape, (k, out[k].shape, ref[k].shape)
        assert jnp.allclose(out[k], ref[k], atol=1e-4, rtol=1e-4), k

    print("KERNEL_OK")
</pallas_src>

<mosaic_0001>
module attributes {stable_mosaic.version = 11 : i64} {
  func.func @_fused_readout_kernel(%arg0: memref<16x128xf32, #tpu.memory_space<vmem>>, %arg1: memref<128x128xf32, #tpu.memory_space<vmem>>, %arg2: memref<1x128xf32, #tpu.memory_space<vmem>>, %arg3: memref<16x128xf32, #tpu.memory_space<vmem>>, %arg4: memref<2x128xf32, #tpu.memory_space<vmem>>) attributes {dimension_semantics = [], scalar_prefetch = 0 : i64, scratch_operands = 0 : i64, tpu.core_type = #tpu.core_type<tc>} {
    %c0 = arith.constant 0 : index
    %c0_0 = arith.constant 0 : index
    %0 = vector.load %arg0[%c0, %c0_0] : memref<16x128xf32, #tpu.memory_space<vmem>>, vector<16x128xf32>
    %c0_1 = arith.constant 0 : index
    %c0_2 = arith.constant 0 : index
    %1 = vector.load %arg1[%c0_1, %c0_2] : memref<128x128xf32, #tpu.memory_space<vmem>>, vector<128x128xf32>
    %cst = arith.constant dense<0.000000e+00> : vector<16x128xf32>
    %2 = tpu.matmul %0, %1, %cst {dimension_numbers = #tpu.dot_dimension_numbers<[1], [0], [0], [1], [0, 0, 1, 1], [], []>} : vector<16x128xf32>, vector<128x128xf32>, vector<16x128xf32> -> vector<16x128xf32>
    %c0_3 = arith.constant 0 : index
    %c0_4 = arith.constant 0 : index
    %3 = vector.load %arg2[%c0_3, %c0_4] : memref<1x128xf32, #tpu.memory_space<vmem>>, vector<1x128xf32>
    %4 = vector.broadcast %3 : vector<1x128xf32> to vector<16x128xf32>
    %5 = arith.addf %2, %4 : vector<16x128xf32>
    %c0_5 = arith.constant 0 : index
    %c0_6 = arith.constant 0 : index
    %6 = vector.load %arg3[%c0_5, %c0_6] : memref<16x128xf32, #tpu.memory_space<vmem>>, vector<16x128xf32>
    tpu.vector_store %arg3[%c0_5, %c0_6], %5 {strides = array<i32>} : memref<16x128xf32, #tpu.memory_space<vmem>>, vector<16x128xf32>,
    %7 = vector.shape_cast %5 : vector<16x128xf32> to vector<2x8x128xf32>
    %cst_7 = arith.constant dense<0.000000e+00> : vector<2x128xf32>
    %8 = vector.multi_reduction <add>, %7, %cst_7 [1] : vector<2x8x128xf32> to vector<2x128xf32>
    %c0_8 = arith.constant 0 : index
    %c0_9 = arith.constant 0 : index
    %9 = vector.load %arg4[%c0_8, %c0_9] : memref<2x128xf32, #tpu.memory_space<vmem>>, vector<2x128xf32>
    tpu.vector_store %arg4[%c0_8, %c0_9], %8 {strides = array<i32>} : memref<2x128xf32, #tpu.memory_space<vmem>>, vector<2x128xf32>,
    return
  }
}

</mosaic_0001>

<bundles_post_ra>
// kernel: _gap_to_abs_fused.1
= control target key start
LH: loop header
LB: loop body
LE: loop exit
PB: predicated region body
PF: predicated region fallthrough
CT: control target
= control target key end

     0   :  { %vm77_vm0 = vcmask 1041409   ;;  %s197_s1 = inlined_call_operand.vmem [shape: f32[128,128], index: 1, kind: input, shape index: {}]   ;;  %s198_s2 = inlined_call_operand.vmem [shape: f32[1,128], index: 2, kind: input, shape index: {}]   ;;  %s199_s0 = inlined_call_operand.vmem [shape: f32[16,128], index: 0, kind: input, shape index: {}]   ;;  %s200_s3 = inlined_call_operand.vmem [shape: f32[16,128], index: 3, kind: output, shape index: {0}]   ;;  %s201_s4 = inlined_call_operand.vmem [shape: f32[2,128], index: 4, kind: output, shape index: {1}]  }
   0x1   :  { %v33_v0 = vld [vmem:[%s197_s1 + $0x78] sm:$0xff]  ;;  %v32_v1 = vld [vmem:[%s197_s1 + $0x70] sm:$0xff]  ;;  %v31_v2 = vld [vmem:[%s197_s1 + $0x68] sm:$0xff] }
   0x2   :  { %38 = vmatpush.msra.mxu0 %v33_v0  ;;  %89 = vmatpush.msra.mxu1 %v33_v0  ;;  %v30_v3 = vld [vmem:[%s197_s1 + $0x60] sm:$0xff]  ;;  %v29_v4 = vld [vmem:[%s197_s1 + $0x58] sm:$0xff]  ;;  %v28_v5 = vld [vmem:[%s197_s1 + $0x50] sm:$0xff] }
   0x3   :  { %v27_v6 = vld [vmem:[%s197_s1 + $0x48] sm:$0xff]  ;;  %v26_v7 = vld [vmem:[%s197_s1 + $0x40] sm:$0xff]  ;;  %v25_v8 = vld [vmem:[%s197_s1 + $0x38] sm:$0xff] }
   0x4   :  { %39 = vmatpush.msra.mxu0 %v32_v1  ;;  %90 = vmatpush.msra.mxu1 %v32_v1  ;;  %v24_v9 = vld [vmem:[%s197_s1 + $0x30] sm:$0xff]  ;;  %v23_v10 = vld [vmem:[%s197_s1 + $0x28] sm:$0xff]  ;;  %v22_v11 = vld [vmem:[%s197_s1 + $0x20] sm:$0xff] }
   0x5   :  { %v21_v12 = vld [vmem:[%s197_s1 + $0x18] sm:$0xff]  ;;  %v20_v13 = vld [vmem:[%s197_s1 + $0x10] sm:$0xff]  ;;  %v19_v14 = vld [vmem:[%s197_s1 + $0x8] sm:$0xff] }
   0x6   :  { %40 = vmatpush.msra.mxu0 %v31_v2  ;;  %91 = vmatpush.msra.mxu1 %v31_v2  ;;  %v18_v15 = vld [vmem:[%s197_s1] sm:$0xff]  ;;  %v17_v17 = vld [vmem:[%s199_s0 + $0x8] sm:$0xff] }
   0x7   :  { %v16_v16 = vld [vmem:[%s199_s0] sm:$0xff] }
   0x8   :  { %41 = vmatpush.msra.mxu0 %v30_v3  ;;  %92 = vmatpush.msra.mxu1 %v30_v3  ;;  %v105_v18 = vld [vmem:[%s198_s2] ss:$0 sm:$0xff] }
   0xa   :  { %42 = vmatpush.msra.mxu0 %v29_v4  ;;  %93 = vmatpush.msra.mxu1 %v29_v4 }
   0xc   :  { %43 = vmatpush.msra.mxu0 %v28_v5  ;;  %94 = vmatpush.msra.mxu1 %v28_v5 }
   0xe   :  { %44 = vmatpush.msra.mxu0 %v27_v6  ;;  %95 = vmatpush.msra.mxu1 %v27_v6 }
  0x10   :  { %45 = vmatpush.msra.mxu0 %v26_v7  ;;  %96 = vmatpush.msra.mxu1 %v26_v7 }
  0x12   :  { %46 = vmatpush.msra.mxu0 %v25_v8  ;;  %97 = vmatpush.msra.mxu1 %v25_v8 }
  0x14   :  { %47 = vmatpush.msra.mxu0 %v24_v9  ;;  %98 = vmatpush.msra.mxu1 %v24_v9 }
  0x16   :  { %48 = vmatpush.msra.mxu0 %v23_v10  ;;  %99 = vmatpush.msra.mxu1 %v23_v10 }
  0x18   :  { %49 = vmatpush.msra.mxu0 %v22_v11  ;;  %100 = vmatpush.msra.mxu1 %v22_v11 }
  0x1a   :  { %50 = vmatpush.msra.mxu0 %v21_v12  ;;  %101 = vmatpush.msra.mxu1 %v21_v12 }
  0x1c   :  { %51 = vmatpush.msra.mxu0 %v20_v13  ;;  %102 = vmatpush.msra.mxu1 %v20_v13 }
  0x1e   :  { %52 = vmatpush.msra.mxu0 %v19_v14  ;;  %103 = vmatpush.msra.mxu1 %v19_v14 }
  0x20   :  { %53 = vmatpush.msra.mxu0 %v18_v15  ;;  %104 = vmatpush.msra.mxu1 %v18_v15 }
  0x21   :  { %54 = vmatmul.f32.vlgmr.msra.gmra.mxu0 %v16_v16  ;;  %57 = vmatmul.f32.vlgmr.msra.gmra.mxu1 %v17_v17 }
  0x9e   :  { %v55_v19 = vpop.f32.mrf.mxu0  ;;  %v58_v20 = vpop.f32.mrf.mxu1 }
  0x9f   :  { %v56_v21 = vadd.f32 %v105_v18, %v55_v19  ;;  %v59_v22 = vadd.f32 %v105_v18, %v58_v20 }
  0xa1   :  { %61 = vst [vmem:[%s200_s3] sm:$0xff] %v56_v21  ;;  %v63_v23 = vrot.slane %v56_v21, 4  ;;  %v69_v24 = vrot.slane %v59_v22, 4 }
  0xa2   :  { %62 = vst [vmem:[%s200_s3 + $0x8] sm:$0xff] %v59_v22 }
  0xa3   :  { %v64_v25 = vadd.f32 %v63_v23, %v56_v21  ;;  %v70_v26 = vadd.f32 %v69_v24, %v59_v22 }
  0xa5   :  { %v65_v27 = vrot.slane %v64_v25, 2  ;;  %v71_v28 = vrot.slane %v70_v26, 2 }
  0xa7   :  { %v66_v29 = vadd.f32 %v65_v27, %v64_v25  ;;  %v72_v30 = vadd.f32 %v71_v28, %v70_v26 }
  0xa9   :  { %v67_v31 = vrot.slane %v66_v29, 1  ;;  %v73_v32 = vrot.slane %v72_v30, 1 }
  0xab   :  { %v68_v33 = vadd.f32 %v67_v31, %v66_v29  ;;  %v74_v34 = vadd.f32 %v73_v32, %v72_v30 }
  0xad   :  { %v78_v35 = vsel %vm77_vm0, %v74_v34, %v68_v33 }
  0xae   :  { %80 = vst [vmem:[%s201_s4] sm:$0x3] %v78_v35 }

</bundles_post_ra>
